<compile_context>
chip_gen: v5e
topology: v5e:2x2
jax: 0.10.0
libtpu: 0.0.40
codegen_flags: <defaults>
</compile_context>

<pallas_src>
import functools

import jax
import jax.numpy as jnp
from jax.experimental import pallas as pl
from jax.experimental.pallas import tpu as pltpu

LANES = 128
_SINGLE_BUF_OK = None  # cached result of the pl.Buffered(1) capability probe


def _round_up(x, m):
    return (x + m - 1) // m * m


def _pick_tile(total, preferred):
    t = max(1, min(preferred, total))
    while total % t:
        t //= 2
    return max(t, 16)


def _default_row_block():
    # v5e MXU is 4x128^2 -> 128 rows already saturate it; v6e/v7x MXU is 2x256^2 -> 256.
    try:
        kind = jax.devices()[0].device_kind.lower()
    except Exception:
        return 128
    return 128 if "v5" in kind else 256


def _single_buffering_supported():
    """Probe once whether pipeline_mode=pl.Buffered(1) lowers on this jax/libtpu."""
    global _SINGLE_BUF_OK
    if _SINGLE_BUF_OK is None:
        try:
            def _probe(x_ref, o_ref):
                o_ref[...] = x_ref[...]

            spec = pl.BlockSpec((8, LANES), lambda i: (0, 0),
                                pipeline_mode=pl.Buffered(1))
            out = pl.pallas_call(
                _probe,
                out_shape=jax.ShapeDtypeStruct((8, LANES), jnp.float32),
                grid=(1,),
                in_specs=[spec],
                out_specs=pl.BlockSpec((8, LANES), lambda i: (0, 0)),
            )(jnp.zeros((8, LANES), jnp.float32))
            jax.block_until_ready(out)
            _SINGLE_BUF_OK = True
        except Exception:
            _SINGLE_BUF_OK = False
    return _SINGLE_BUF_OK


def _resident_spec(block_shape, index_map):
    """BlockSpec for a grid-invariant operand: single-buffered when supported so a
    never-changing block does not pay a 2x VMEM footprint (matters at graph scale)."""
    if _single_buffering_supported():
        return pl.BlockSpec(block_shape, index_map, pipeline_mode=pl.Buffered(1))
    return pl.BlockSpec(block_shape, index_map)


# ---------------------------------------------------------------------------
# Kernels
# ---------------------------------------------------------------------------

def gcn_fused_kernel(adj_ref, x_ref, w_ref, b_ref, out_ref, *, num_layers, out_c):
    """All GCN layers fused; everything VMEM resident (small-graph / demo path).

    adj_ref: (Np, Np)       bf16  normalized adjacency, zero padded, lane-dense
    x_ref:   (Np, P)        bf16  input features, zero padded
    w_ref:   (L, P, P)      bf16  BN-folded weights, stored (in, out)
    b_ref:   (L, 1, P)      f32   BN-folded biases
    out_ref: (Np, P)        f32   log-probabilities (padded lanes ~ -1e30)
    """
    adj = adj_ref[...]
    h = x_ref[...]
    for l in range(num_layers):
        # Transform then aggregate (same order as the PyTorch module); f32 MXU acc.
        hw = jnp.dot(h, w_ref[l], preferred_element_type=jnp.float32)
        z = jnp.dot(adj, hw.astype(jnp.bfloat16),
                    preferred_element_type=jnp.float32) + b_ref[l]
        if l < num_layers - 1:
            # TODO(synk): F.dropout is identity in eval mode; training-mode dropout
            # would need pltpu.prng_* and is intentionally not implemented.
            h = jnp.maximum(z, 0.0).astype(jnp.bfloat16)
        else:
            lane = jax.lax.broadcasted_iota(jnp.int32, z.shape, dimension=1)
            z = jnp.where(lane < out_c, z, jnp.float32(-1e30))
            m = jnp.max(z, axis=-1, keepdims=True)
            s = z - m
            out_ref[...] = s - jnp.log(jnp.sum(jnp.exp(s), axis=-1, keepdims=True))


def transform_kernel(h_ref, w_ref, hw_ref):
    """Hoisted feature transform for one row tile: hw = h @ W_folded.

    h_ref: (tm, P) bf16, w_ref: (P, P) bf16 resident, hw_ref: (tm, P) bf16.
    """
    hw_ref[...] = jnp.dot(h_ref[...], w_ref[...],
                          preferred_element_type=jnp.float32).astype(hw_ref.dtype)


def aggregate_kernel(adj_ref, hw_ref, b_ref, out_ref, acc_ref, *, last, out_c):
    """K-tiled aggregation z = adj @ hw + b with fused ReLU / log_softmax epilogue.

    adj_ref: (tm, tk) bf16  streamed adjacency panel
    hw_ref:  (tk, P)  bf16  streamed transformed-activation panel
    b_ref:   (1, P)   f32   resident bias
    out_ref: (tm, P)  bf16 (hidden layers) / f32 (last layer: log-probs)
    acc_ref: (tm, P)  f32   VMEM accumulator scratch
    """
    k = pl.program_id(1)

    @pl.when(k == 0)
    def _():
        acc_ref[...] = jnp.zeros_like(acc_ref)

    acc_ref[...] += jnp.dot(adj_ref[...], hw_ref[...],
                            preferred_element_type=jnp.float32)

    @pl.when(k == pl.num_programs(1) - 1)
    def _():
        z = acc_ref[...] + b_ref[...]
        if not last:
            out_ref[...] = jnp.maximum(z, 0.0).astype(out_ref.dtype)
        else:
            lane = jax.lax.broadcasted_iota(jnp.int32, z.shape, dimension=1)
            zz = jnp.where(lane < out_c, z, jnp.float32(-1e30))
            m = jnp.max(zz, axis=-1, keepdims=True)
            s = zz - m
            out_ref[...] = (s - jnp.log(jnp.sum(jnp.exp(s), axis=-1, keepdims=True))
                            ).astype(out_ref.dtype)


# ---------------------------------------------------------------------------
# Wrapper
# ---------------------------------------------------------------------------

def _fold_and_pad_params(convs, bns, P, eps):
    """Fold eval-mode BN into hidden layers and zero-pad everything to P lanes."""
    num_layers = len(convs)
    ws, bs = [], []
    for l, (w, b) in enumerate(convs):
        w = w.astype(jnp.float32)
        b = b.astype(jnp.float32)
        if l < num_layers - 1:
            g, bt, m, v = bns[l]
            scale = g * jax.lax.rsqrt(v + eps)
            w = w * scale[None, :]
            b = (b - m) * scale + bt
        w_p = jnp.pad(w, ((0, P - w.shape[0]), (0, P - w.shape[1]))).astype(jnp.bfloat16)
        b_p = jnp.pad(b, (0, P - b.shape[0])).reshape(1, P)
        ws.append(w_p)
        bs.append(b_p)
    return ws, bs


def gcn_forward(x, adj, convs, bns, *, eps=1e-5, fuse=None,
                row_block=None, col_block=None):
    """Eval-mode GCN forward.

    convs: list of (w, b) with w stored (in, out) (i.e. PyTorch weight.T), b shape (out,)
    bns:   list of (gamma, beta, running_mean, running_var), one per hidden layer
    fuse:  None = auto (fuse all layers into one pallas_call when it fits VMEM),
           True/False to force a path.
    """
    N, in_c = x.shape
    num_layers = len(convs)
    out_c = convs[-1][0].shape[1]
    P = _round_up(max([in_c, out_c] + [w.shape[1] for (w, _) in convs]), LANES)
    Np = _round_up(N, LANES)  # lane-dense adjacency panels / padded node rows

    ws, bs = _fold_and_pad_params(convs, bns, P, eps)

    # TODO(synk): on v7x the adjacency could be stored fp8 (e4m3) to halve HBM bytes.
    adj_p = jnp.pad(adj.astype(jnp.float32),
                    ((0, Np - N), (0, Np - N))).astype(jnp.bfloat16)
    h = jnp.pad(x.astype(jnp.float32),
                ((0, Np - N), (0, P - in_c))).astype(jnp.bfloat16)

    if fuse is None:
        # Rough resident footprint of the fused kernel (adj + h + weights + f32 temps),
        # with headroom under the 32 MiB default scoped-VMEM budget on all generations.
        fused_bytes = (2 * Np * Np + 2 * Np * P + 2 * P * P * num_layers
                       + 12 * Np * P + 4 * num_layers * P)
        fuse = fused_bytes <= 16 * 1024 * 1024

    if fuse:
        # ---------------- small-graph path: one pallas_call, one grid step ----------------
        w_stack = jnp.stack(ws)   # (L, P, P) bf16
        b_stack = jnp.stack(bs)   # (L, 1, P) f32
        kernel = functools.partial(gcn_fused_kernel,
                                   num_layers=num_layers, out_c=out_c)
        out = pl.pallas_call(
            kernel,
            out_shape=jax.ShapeDtypeStruct((Np, P), jnp.float32),
            grid=(1,),
            in_specs=[
                pl.BlockSpec((Np, Np), lambda i: (0, 0)),
                pl.BlockSpec((Np, P), lambda i: (0, 0)),
                pl.BlockSpec((num_layers, P, P), lambda i: (0, 0, 0)),
                pl.BlockSpec((num_layers, 1, P), lambda i: (0, 0, 0)),
            ],
            out_specs=pl.BlockSpec((Np, P), lambda i: (0, 0)),
            compiler_params=pltpu.CompilerParams(
                dimension_semantics=("arbitrary",)),
        )(adj_p, h, w_stack, b_stack)
        return out[:N, :out_c]

    # ---------------- graph-scale path: per-layer, row x K tiled ----------------
    tm = _pick_tile(Np, row_block if row_block is not None else _default_row_block())
    tk = _pick_tile(Np, col_block if col_block is not None else 1024)
    assert Np % tm == 0 and Np % tk == 0 and tm % 16 == 0 and tk % LANES == 0

    for l in range(num_layers):
        last = l == num_layers - 1

        # 1) Hoisted feature transform: hw = h @ W_folded (small row-tiled matmul).
        hw = pl.pallas_call(
            transform_kernel,
            out_shape=jax.ShapeDtypeStruct((Np, P), jnp.bfloat16),
            grid=(Np // tm,),
            in_specs=[
                pl.BlockSpec((tm, P), lambda i: (i, 0)),
                _resident_spec((P, P), lambda i: (0, 0)),     # resident folded weight
            ],
            out_specs=pl.BlockSpec((tm, P), lambda i: (i, 0)),
            compiler_params=pltpu.CompilerParams(
                dimension_semantics=("parallel",)),
        )(h, ws[l])

        # 2) Row x K tiled aggregation with fused bias + ReLU / log_softmax epilogue.
        #    K-tiling keeps VMEM use independent of N (critical for v7x's 64 MiB);
        #    at graph scale raise vmem_limit_bytes on v5e/v6e for bigger panels.
        out_dtype = jnp.float32 if last else jnp.bfloat16
        kernel = functools.partial(aggregate_kernel, last=last, out_c=out_c)
        h = pl.pallas_call(
            kernel,
            out_shape=jax.ShapeDtypeStruct((Np, P), out_dtype),
            grid=(Np // tm, Np // tk),
            in_specs=[
                pl.BlockSpec((tm, tk), lambda i, k: (i, k)),   # streamed adj panel
                pl.BlockSpec((tk, P), lambda i, k: (k, 0)),    # streamed hw panel
                _resident_spec((1, P), lambda i, k: (0, 0)),   # resident bias
            ],
            out_specs=pl.BlockSpec((tm, P), lambda i, k: (i, 0)),
            scratch_shapes=[pltpu.VMEM((tm, P), jnp.float32)],
            compiler_params=pltpu.CompilerParams(
                dimension_semantics=("parallel", "arbitrary")),
        )(adj_p, hw, bs[l])

    return h[:N, :out_c]


# ---------------------------------------------------------------------------
# Pure-JAX references
# ---------------------------------------------------------------------------

def reference_forward_mirrored(x, adj, convs, bns, *, eps=1e-5):
    """Pure-JAX forward mirroring the kernel's precision choices (bf16 MXU operands,
    f32 accumulation, transform-then-aggregate, folded BN)."""
    hp = jax.lax.Precision.HIGHEST
    f32, bf16 = jnp.float32, jnp.bfloat16
    num_layers = len(convs)
    A = adj.astype(bf16).astype(f32)
    h = x.astype(f32).astype(bf16).astype(f32)
    for l, (w, b) in enumerate(convs):
        w = w.astype(f32)
        b = b.astype(f32)
        if l < num_layers - 1:
            g, bt, m, v = bns[l]
            scale = g * jax.lax.rsqrt(v + eps)
            w = w * scale[None, :]
            b = (b - m) * scale + bt
        w_q = w.astype(bf16).astype(f32)
        hw = jnp.dot(h, w_q, precision=hp).astype(bf16).astype(f32)
        z = jnp.dot(A, hw, precision=hp) + b
        if l < num_layers - 1:
            h = jnp.maximum(z, 0.0).astype(bf16).astype(f32)
        else:
            m_ = jnp.max(z, axis=-1, keepdims=True)
            s = z - m_
            return s - jnp.log(jnp.sum(jnp.exp(s), axis=-1, keepdims=True))


def reference_forward_f32(x, adj, convs, bns, *, eps=1e-5):
    """Plain f32 semantic reference (transform-then-aggregate, explicit BN)."""
    hp = jax.lax.Precision.HIGHEST
    h = x.astype(jnp.float32)
    num_layers = len(convs)
    for l in range(num_layers - 1):
        w, b = convs[l]
        y = jnp.dot(adj, jnp.dot(h, w, precision=hp), precision=hp) + b
        g, bt, m, v = bns[l]
        y = (y - m) * jax.lax.rsqrt(v + eps) * g + bt
        h = jnp.maximum(y, 0.0)
    w, b = convs[-1]
    y = jnp.dot(adj, jnp.dot(h, w, precision=hp), precision=hp) + b
    return jax.nn.log_softmax(y, axis=-1)


# ---------------------------------------------------------------------------
# Demo / self-test
# ---------------------------------------------------------------------------

def make_problem(key, n, in_c, hid_c, out_c, num_layers):
    kx, ka, kp = jax.random.split(key, 3)
    x = jax.random.normal(kx, (n, in_c), jnp.float32)

    # Dense GCN-normalized adjacency: symmetric random edges + self loops,
    # D^{-1/2} (A + I) D^{-1/2}  (what GCNConv's gcn_norm preprocessing produces).
    a = (jax.random.uniform(ka, (n, n)) > 0.9).astype(jnp.float32)
    a = jnp.maximum(a, a.T)
    a = a + jnp.eye(n, dtype=jnp.float32)
    dinv = jax.lax.rsqrt(jnp.sum(a, axis=1))
    adj = a * dinv[:, None] * dinv[None, :]

    dims = [in_c] + [hid_c] * (num_layers - 1) + [out_c]
    convs, bns = [], []
    keys = jax.random.split(kp, num_layers * 6)
    for l in range(num_layers):
        ci, co = dims[l], dims[l + 1]
        sc = 1.0 / jnp.sqrt(jnp.float32(ci))
        w = jax.random.uniform(keys[6 * l + 0], (ci, co), jnp.float32, -sc, sc)
        b = jax.random.uniform(keys[6 * l + 1], (co,), jnp.float32, -sc, sc)
        convs.append((w, b))
        if l < num_layers - 1:
            g = jax.random.uniform(keys[6 * l + 2], (co,), jnp.float32, 0.5, 1.5)
            bt = 0.1 * jax.random.normal(keys[6 * l + 3], (co,), jnp.float32)
            m = 0.1 * jax.random.normal(keys[6 * l + 4], (co,), jnp.float32)
            v = jax.random.uniform(keys[6 * l + 5], (co,), jnp.float32, 0.5, 1.5)
            bns.append((g, bt, m, v))
    return x, adj, convs, bns


if __name__ == "__main__":
    EPS = 1e-5
    IN_C, HID_C, OUT_C, NUM_LAYERS = 32, 32, 16, 3
    key = jax.random.PRNGKey(0)
    k1, k2 = jax.random.split(key)

    # --- small graph (demo size): fully fused single pallas_call, one grid step ---
    N1 = 64
    x1, adj1, convs1, bns1 = make_problem(k1, N1, IN_C, HID_C, OUT_C, NUM_LAYERS)
    out1 = jax.block_until_ready(gcn_forward(x1, adj1, convs1, bns1, eps=EPS))
    assert out1.shape == (N1, OUT_C)
    ref1m = reference_forward_mirrored(x1, adj1, convs1, bns1, eps=EPS)
    ref1f = reference_forward_f32(x1, adj1, convs1, bns1, eps=EPS)
    assert jnp.allclose(out1, ref1m, atol=5e-3, rtol=5e-3), "fused: mismatch vs mirrored ref"
    assert jnp.allclose(out1, ref1f, atol=5e-2, rtol=5e-2), "fused: mismatch vs f32 ref"

    # --- larger graph: graph-scale structure (hoisted transform + row x K tiling) ---
    N2 = 256
    x2, adj2, convs2, bns2 = make_problem(k2, N2, IN_C, HID_C, OUT_C, NUM_LAYERS)
    out2 = jax.block_until_ready(
        gcn_forward(x2, adj2, convs2, bns2, eps=EPS, fuse=False,
                    row_block=128, col_block=128))
    assert out2.shape == (N2, OUT_C)
    ref2m = reference_forward_mirrored(x2, adj2, convs2, bns2, eps=EPS)
    ref2f = reference_forward_f32(x2, adj2, convs2, bns2, eps=EPS)
    assert jnp.allclose(out2, ref2m, atol=5e-3, rtol=5e-3), "tiled: mismatch vs mirrored ref"
    assert jnp.allclose(out2, ref2f, atol=1e-1, rtol=1e-1), "tiled: mismatch vs f32 ref"

    print("KERNEL_OK")
</pallas_src>

<mosaic_0001>
module attributes {stable_mosaic.version = 11 : i64} {
  func.func @gcn_fused_kernel(%arg0: i32, %arg1: memref<128x128xbf16, #tpu.memory_space<vmem>>, %arg2: memref<128x128xbf16, #tpu.memory_space<vmem>>, %arg3: memref<3x128x128xbf16, #tpu.memory_space<vmem>>, %arg4: memref<3x1x128xf32, #tpu.memory_space<vmem>>, %arg5: memref<128x128xf32, #tpu.memory_space<vmem>>) attributes {dimension_semantics = [#tpu.dimension_semantics<arbitrary>], iteration_bounds = array<i64: 1>, scalar_prefetch = 0 : i64, scratch_operands = 0 : i64, tpu.core_type = #tpu.core_type<tc>, window_params = [{pipeline_mode = #tpu.pipeline_mode<synchronous>, transform_indices = @transform_0, window_bounds = array<i64: 128, 128>}, {pipeline_mode = #tpu.pipeline_mode<synchronous>, transform_indices = @transform_1, window_bounds = array<i64: 128, 128>}, {pipeline_mode = #tpu.pipeline_mode<synchronous>, transform_indices = @transform_2, window_bounds = array<i64: 3, 128, 128>}, {pipeline_mode = #tpu.pipeline_mode<synchronous>, transform_indices = @transform_3, window_bounds = array<i64: 3, 1, 128>}, {pipeline_mode = #tpu.pipeline_mode<synchronous>, transform_indices = @transform_4, window_bounds = array<i64: 128, 128>}]} {
    %c0 = arith.constant 0 : index
    %c0_0 = arith.constant 0 : index
    %0 = vector.load %arg1[%c0, %c0_0] : memref<128x128xbf16, #tpu.memory_space<vmem>>, vector<128x128xbf16>
    %c0_1 = arith.constant 0 : index
    %c0_2 = arith.constant 0 : index
    %1 = vector.load %arg2[%c0_1, %c0_2] : memref<128x128xbf16, #tpu.memory_space<vmem>>, vector<128x128xbf16>
    %c0_3 = arith.constant 0 : index
    %c0_4 = arith.constant 0 : index
    %c0_5 = arith.constant 0 : index
    %2 = vector.load %arg3[%c0_3, %c0_4, %c0_5] : memref<3x128x128xbf16, #tpu.memory_space<vmem>>, vector<1x128x128xbf16>
    %3 = vector.shape_cast %2 : vector<1x128x128xbf16> to vector<128x128xbf16>
    %cst = arith.constant dense<0.000000e+00> : vector<128x128xf32>
    %4 = tpu.matmul %1, %3, %cst {dimension_numbers = #tpu.dot_dimension_numbers<[1], [0], [0], [1], [0, 0, 1, 1], [], []>} : vector<128x128xbf16>, vector<128x128xbf16>, vector<128x128xf32> -> vector<128x128xf32>
    %5 = arith.truncf %4 : vector<128x128xf32> to vector<128x128xbf16>
    %cst_6 = arith.constant dense<0.000000e+00> : vector<128x128xf32>
    %6 = tpu.matmul %0, %5, %cst_6 {dimension_numbers = #tpu.dot_dimension_numbers<[1], [0], [0], [1], [0, 0, 1, 1], [], []>} : vector<128x128xbf16>, vector<128x128xbf16>, vector<128x128xf32> -> vector<128x128xf32>
    %c0_7 = arith.constant 0 : index
    %c0_8 = arith.constant 0 : index
    %c0_9 = arith.constant 0 : index
    %7 = vector.load %arg4[%c0_7, %c0_8, %c0_9] : memref<3x1x128xf32, #tpu.memory_space<vmem>>, vector<1x1x128xf32>
    %8 = vector.shape_cast %7 : vector<1x1x128xf32> to vector<1x128xf32>
    %9 = vector.broadcast %8 : vector<1x128xf32> to vector<128x128xf32>
    %10 = arith.addf %6, %9 : vector<128x128xf32>
    %cst_10 = arith.constant 0.000000e+00 : f32
    %11 = vector.broadcast %cst_10 : f32 to vector<128x128xf32>
    %12 = arith.maximumf %10, %11 : vector<128x128xf32>
    %13 = arith.truncf %12 : vector<128x128xf32> to vector<128x128xbf16>
    %c1 = arith.constant 1 : index
    %c0_11 = arith.constant 0 : index
    %c0_12 = arith.constant 0 : index
    %14 = vector.load %arg3[%c1, %c0_11, %c0_12] : memref<3x128x128xbf16, #tpu.memory_space<vmem>>, vector<1x128x128xbf16>
    %15 = vector.shape_cast %14 : vector<1x128x128xbf16> to vector<128x128xbf16>
    %cst_13 = arith.constant dense<0.000000e+00> : vector<128x128xf32>
    %16 = tpu.matmul %13, %15, %cst_13 {dimension_numbers = #tpu.dot_dimension_numbers<[1], [0], [0], [1], [0, 0, 1, 1], [], []>} : vector<128x128xbf16>, vector<128x128xbf16>, vector<128x128xf32> -> vector<128x128xf32>
    %17 = arith.truncf %16 : vector<128x128xf32> to vector<128x128xbf16>
    %cst_14 = arith.constant dense<0.000000e+00> : vector<128x128xf32>
    %18 = tpu.matmul %0, %17, %cst_14 {dimension_numbers = #tpu.dot_dimension_numbers<[1], [0], [0], [1], [0, 0, 1, 1], [], []>} : vector<128x128xbf16>, vector<128x128xbf16>, vector<128x128xf32> -> vector<128x128xf32>
    %c1_15 = arith.constant 1 : index
    %c0_16 = arith.constant 0 : index
    %c0_17 = arith.constant 0 : index
    %19 = vector.load %arg4[%c1_15, %c0_16, %c0_17] : memref<3x1x128xf32, #tpu.memory_space<vmem>>, vector<1x1x128xf32>
    %20 = vector.shape_cast %19 : vector<1x1x128xf32> to vector<1x128xf32>
    %21 = vector.broadcast %20 : vector<1x128xf32> to vector<128x128xf32>
    %22 = arith.addf %18, %21 : vector<128x128xf32>
    %cst_18 = arith.constant 0.000000e+00 : f32
    %23 = vector.broadcast %cst_18 : f32 to vector<128x128xf32>
    %24 = arith.maximumf %22, %23 : vector<128x128xf32>
    %25 = arith.truncf %24 : vector<128x128xf32> to vector<128x128xbf16>
    %c2 = arith.constant 2 : index
    %c0_19 = arith.constant 0 : index
    %c0_20 = arith.constant 0 : index
    %26 = vector.load %arg3[%c2, %c0_19, %c0_20] : memref<3x128x128xbf16, #tpu.memory_space<vmem>>, vector<1x128x128xbf16>
    %27 = vector.shape_cast %26 : vector<1x128x128xbf16> to vector<128x128xbf16>
    %cst_21 = arith.constant dense<0.000000e+00> : vector<128x128xf32>
    %28 = tpu.matmul %25, %27, %cst_21 {dimension_numbers = #tpu.dot_dimension_numbers<[1], [0], [0], [1], [0, 0, 1, 1], [], []>} : vector<128x128xbf16>, vector<128x128xbf16>, vector<128x128xf32> -> vector<128x128xf32>
    %29 = arith.truncf %28 : vector<128x128xf32> to vector<128x128xbf16>
    %cst_22 = arith.constant dense<0.000000e+00> : vector<128x128xf32>
    %30 = tpu.matmul %0, %29, %cst_22 {dimension_numbers = #tpu.dot_dimension_numbers<[1], [0], [0], [1], [0, 0, 1, 1], [], []>} : vector<128x128xbf16>, vector<128x128xbf16>, vector<128x128xf32> -> vector<128x128xf32>
    %c2_23 = arith.constant 2 : index
    %c0_24 = arith.constant 0 : index
    %c0_25 = arith.constant 0 : index
    %31 = vector.load %arg4[%c2_23, %c0_24, %c0_25] : memref<3x1x128xf32, #tpu.memory_space<vmem>>, vector<1x1x128xf32>
    %32 = vector.shape_cast %31 : vector<1x1x128xf32> to vector<1x128xf32>
    %33 = vector.broadcast %32 : vector<1x128xf32> to vector<128x128xf32>
    %34 = arith.addf %30, %33 : vector<128x128xf32>
    %35 = tpu.iota {dimensions = array<i32: 1>} : vector<128x128xi32>
    %c16_i32 = arith.constant 16 : i32
    %36 = vector.broadcast %c16_i32 : i32 to vector<128x128xi32>
    %37 = arith.cmpi slt, %35, %36 : vector<128x128xi32>
    %cst_26 = arith.constant -1.000000e+30 : f32
    %38 = vector.broadcast %cst_26 : f32 to vector<128x128xf32>
    %39 = arith.select %37, %34, %38 : vector<128x128xi1>, vector<128x128xf32>
    %cst_27 = arith.constant dense<0xFF800000> : vector<128xf32>
    %40 = vector.multi_reduction <maximumf>, %39, %cst_27 [1] : vector<128x128xf32> to vector<128xf32>
    %41 = vector.shape_cast %40 : vector<128xf32> to vector<128x1xf32>
    %42 = vector.broadcast %41 : vector<128x1xf32> to vector<128x128xf32>
    %43 = arith.subf %39, %42 : vector<128x128xf32>
    %44 = math.exp %43 : vector<128x128xf32>
    %cst_28 = arith.constant dense<0.000000e+00> : vector<128xf32>
    %45 = vector.multi_reduction <add>, %44, %cst_28 [1] : vector<128x128xf32> to vector<128xf32>
    %46 = vector.shape_cast %45 : vector<128xf32> to vector<128x1xf32>
    %47 = math.log %46 : vector<128x1xf32>
    %48 = vector.broadcast %47 : vector<128x1xf32> to vector<128x128xf32>
    %49 = arith.subf %43, %48 : vector<128x128xf32>
    %c0_29 = arith.constant 0 : index
    %c0_30 = arith.constant 0 : index
    %50 = vector.load %arg5[%c0_29, %c0_30] : memref<128x128xf32, #tpu.memory_space<vmem>>, vector<128x128xf32>
    tpu.vector_store %arg5[%c0_29, %c0_30], %49 {strides = array<i32>} : memref<128x128xf32, #tpu.memory_space<vmem>>, vector<128x128xf32>,
    return
  }
  func.func @transform_0(%arg0: i32) -> (i32, i32) {
    %c0_i32 = arith.constant 0 : i32
    %c0_i32_0 = arith.constant 0 : i32
    %c0_i32_1 = arith.constant 0 : i32
    return %c0_i32, %c0_i32_0 : i32, i32
  }
  func.func @transform_1(%arg0: i32) -> (i32, i32) {
    %c0_i32 = arith.constant 0 : i32
    %c0_i32_0 = arith.constant 0 : i32
    %c0_i32_1 = arith.constant 0 : i32
    return %c0_i32, %c0_i32_0 : i32, i32
  }
  func.func @transform_2(%arg0: i32) -> (i32, i32, i32) {
    %c0_i32 = arith.constant 0 : i32
    %c0_i32_0 = arith.constant 0 : i32
    %c0_i32_1 = arith.constant 0 : i32
    %c0_i32_2 = arith.constant 0 : i32
    return %c0_i32, %c0_i32_0, %c0_i32_1 : i32, i32, i32
  }
  func.func @transform_3(%arg0: i32) -> (i32, i32, i32) {
    %c0_i32 = arith.constant 0 : i32
    %c0_i32_0 = arith.constant 0 : i32
    %c0_i32_1 = arith.constant 0 : i32
    %c0_i32_2 = arith.constant 0 : i32
    return %c0_i32, %c0_i32_0, %c0_i32_1 : i32, i32, i32
  }
  func.func @transform_4(%arg0: i32) -> (i32, i32) {
    %c0_i32 = arith.constant 0 : i32
    %c0_i32_0 = arith.constant 0 : i32
    %c0_i32_1 = arith.constant 0 : i32
    return %c0_i32, %c0_i32_0 : i32, i32
  }
}

</mosaic_0001>

<bundles_post_ra>
// kernel: tpu_custom_call.1
= control target key start
LH: loop header
LB: loop body
LE: loop exit
PB: predicated region body
PF: predicated region fallthrough
CT: control target
= control target key end

     0   :  { %9 = vsyncpa [#allocation3], 0  ;;  %s1689_s0 = inlined_call_operand.hbm [shape: bf16[128,128], index: 0, kind: input, shape index: {}]   ;;  %s1690_s1 = inlined_call_operand.hbm [shape: bf16[128,128], index: 1, kind: input, shape index: {}]   ;;  %s1691_s2 = inlined_call_operand.hbm [shape: bf16[3,128,128], index: 2, kind: input, shape index: {}]   ;;  %s1692_s3 = inlined_call_operand.hbm [shape: f32[3,1,128], index: 3, kind: input, shape index: {}]   ;;  %s1693_s4 = inlined_call_operand.hbm [shape: f32[128,128], index: 4, kind: output, shape index: {}]  }
   0x1   :  { %10 = vsyncpa [#allocation6], 0 }
   0x2   :  { %11 = vsyncpa [#allocation9], 0 }
   0x3   :  { %12 = vsyncpa [#allocation4], 0  ;;  %s30_s17 = sshll.u32 %s1690_s1, 4  ;;  %s1421_s18 = smov [#allocation5]   ;;  %s31_s17 = int_to_ptr.hbm [resolvable:$true] %s30_s17 }
   0x4   :  { %s32_s19 = sshll.u32 %s1421_s18, 4  ;;  %s17_s22 = sshll.u32 %s1689_s0, 4  ;;  %s33_s19 = int_to_ptr.vmem [resolvable:$true] %s32_s19  ;;  %s18_s22 = int_to_ptr.hbm [resolvable:$true] %s17_s22 }
   0x5   :  { %s1422_s23 = smov 64   ;;  %s1423_s24 = smov 4  }
   0x6   :  { %38 = dma.hbm_to_vmem [thread:$0]  %s31_s17, 1024, %s33_s19, [#allocation6], %s1422_s23, %s1422_s23, %s1423_s24  }
   0x7   :  { %s1424_s25 = smov [#allocation2]   ;;  %s43_s29 = sshll.u32 %s1691_s2, 4  ;;  %s44_s29 = int_to_ptr.hbm [resolvable:$true] %s43_s29 }
   0x8   :  { %s19_s26 = sshll.u32 %s1424_s25, 4  ;;  %s56_s5 = sshll.u32 %s1692_s3, 4  ;;  %s20_s26 = int_to_ptr.vmem [resolvable:$true] %s19_s26  ;;  %s57_s5 = int_to_ptr.hbm [resolvable:$true] %s56_s5 }
   0x9   :  { %25 = dma.hbm_to_vmem [thread:$0]  %s18_s22, 1024, %s20_s26, [#allocation3], %s1422_s23, %s1422_s23, %s1423_s24  }
   0xa   :  { %s1425_s6 = smov [#allocation7]   ;;  %s1426_s0 = smov [#allocation8]  }
   0xb   :  { %s45_s7 = sshll.u32 %s1425_s6, 4  ;;  %s58_s8 = sshll.u32 %s1426_s0, 4  ;;  %s46_s7 = int_to_ptr.vmem [resolvable:$true] %s45_s7  ;;  %s59_s8 = int_to_ptr.vmem [resolvable:$true] %s58_s8 }
   0xc   :  { %51 = dma.hbm_to_vmem [thread:$0]  %s44_s29, 3072, %s46_s7, [#allocation6], %s1422_s23, %s1422_s23, %s1423_s24  }
   0xd   :  { %s1427_s9 = smov 16   ;;  %s1428_s10 = smov 1  }
   0xe   :  { %64 = dma.hbm_to_vmem [thread:$0]  %s57_s5, 48, %s59_s8, [#allocation9], %s1427_s9, %s1427_s9, %s1428_s10  }
   0xf   :  { %1413 = dma.done.wait [#allocation3], 1024  }
  0x10   :  { %1414 = vsyncadd [#allocation3], 4294966272 }
  0x11   :  { %1415 = dma.done.wait [#allocation6], 4096  }
  0x12   :  { %1416 = vsyncadd [#allocation6], 4294963200 }
  0x13   :  { %1417 = dma.done.wait [#allocation9], 48  }
  0x14   :  { %1418 = vsyncadd [#allocation9], 4294967248  ;;  %v1182_v0 = vld [vmem:[#allocation7 + $0x38] sm:$0xff]  ;;  %v1181_v1 = vld [vmem:[#allocation7 + $0x30] sm:$0xff]  ;;  %s1429_s2 = smov [#allocation10]   ;;  %s984_s13 = sshll.u32 %s1693_s4, 4  ;;  %s985_s13 = int_to_ptr.hbm [resolvable:$true] %s984_s13 }
  0x15   :  { %1199 = vmatpush.bf16.msra.mxu2 %v1182_v0  ;;  %225 = vmatpush.bf16.msra.mxu0 %v1182_v0  ;;  %v1180_v2 = vld [vmem:[#allocation7 + $0x28] sm:$0xff]  ;;  %v1179_v3 = vld [vmem:[#allocation7 + $0x20] sm:$0xff]  ;;  %v1178_v4 = vld [vmem:[#allocation7 + $0x18] sm:$0xff]  ;;  %s982_s3 = sshll.u32 %s1429_s2, 4  ;;  %s1430_s14 = smov 128   ;;  %s983_s3 = int_to_ptr.vmem [resolvable:$true] %s982_s3 }
  0x16   :  { %v1177_v5 = vld [vmem:[#allocation7 + $0x10] sm:$0xff]  ;;  %v1176_v6 = vld [vmem:[#allocation7 + $0x8] sm:$0xff]  ;;  %v1175_v7 = vld [vmem:[#allocation7] sm:$0xff]  ;;  %s1431_s15 = smov 8  }
  0x17   :  { %v1171_v8 = vld [vmem:[#allocation5 + $0x20] sm:$0xff]  ;;  %v1172_v10 = vld [vmem:[#allocation5 + $0x28] sm:$0xff]  ;;  %v1173_v12 = vld [vmem:[#allocation5 + $0x30] sm:$0xff] }
  0x18   :  { %v1167_v9 = vld [vmem:[#allocation5] sm:$0xff]  ;;  %v1168_v11 = vld [vmem:[#allocation5 + $0x8] sm:$0xff]  ;;  %v1169_v13 = vld [vmem:[#allocation5 + $0x10] sm:$0xff] }
  0x19   :  { %1200 = vmatpush.bf16.msra.mxu2 %v1181_v1  ;;  %226 = vmatpush.bf16.msra.mxu0 %v1181_v1  ;;  %v1174_v14 = vld [vmem:[#allocation5 + $0x38] sm:$0xff]  ;;  %v1469_v40 = vld [vmem:[#allocation2] sm:$0xff]  ;;  %v1472_v41 = vld [vmem:[#allocation2 + $0x8] sm:$0xff] }
  0x1a   :  { %v1170_v15 = vld [vmem:[#allocation5 + $0x18] sm:$0xff]  ;;  %v1475_v42 = vld [vmem:[#allocation2 + $0x20] sm:$0xff]  ;;  %v1478_v43 = vld [vmem:[#allocation2 + $0x10] sm:$0xff] }
  0x1b   :  { %v1480_v44 = vld [vmem:[#allocation2 + $0x28] sm:$0xff]  ;;  %v1190_v45 = vld [vmem:[#allocation7 + $0x78] sm:$0xff]  ;;  %v1189_v46 = vld [vmem:[#allocation7 + $0x70] sm:$0xff] }
  0x1c   :  { %v1188_v47 = vld [vmem:[#allocation7 + $0x68] sm:$0xff]  ;;  %v1484_v48 = vld [vmem:[#allocation2 + $0x18] sm:$0xff]  ;;  %v1187_v49 = vld [vmem:[#allocation7 + $0x60] sm:$0xff] }
  0x1d   :  { %1201 = vmatpush.bf16.msra.mxu2 %v1180_v2  ;;  %227 = vmatpush.bf16.msra.mxu0 %v1180_v2  ;;  %v1486_v50 = vld [vmem:[#allocation2 + $0x30] sm:$0xff]  ;;  %v1490_v51 = vld [vmem:[#allocation2 + $0x38] sm:$0xff]  ;;  %v1184_v54 = vld [vmem:[#allocation7 + $0x48] sm:$0xff] }
  0x1e   :  { %v1186_v52 = vld [vmem:[#allocation7 + $0x58] sm:$0xff]  ;;  %v1185_v53 = vld [vmem:[#allocation7 + $0x50] sm:$0xff]  ;;  %v1183_v55 = vld [vmem:[#allocation7 + $0x40] sm:$0xff] }
  0x1f   :  { %v1226_v57 = vld [vmem:[#allocation8] ss:$0 sm:$0xff] }
  0x21   :  { %1202 = vmatpush.bf16.msra.mxu2 %v1179_v3  ;;  %228 = vmatpush.bf16.msra.mxu0 %v1179_v3 }
  0x25   :  { %1203 = vmatpush.bf16.msra.mxu2 %v1178_v4  ;;  %229 = vmatpush.bf16.msra.mxu0 %v1178_v4 }
  0x29   :  { %1204 = vmatpush.bf16.msra.mxu2 %v1177_v5  ;;  %230 = vmatpush.bf16.msra.mxu0 %v1177_v5 }
  0x2d   :  { %1205 = vmatpush.bf16.msra.mxu2 %v1176_v6  ;;  %231 = vmatpush.bf16.msra.mxu0 %v1176_v6 }
  0x31   :  { %1206 = vmatpush.bf16.msra.mxu2 %v1175_v7  ;;  %232 = vmatpush.bf16.msra.mxu0 %v1175_v7 }
  0x34   :  { %253 = vmatmul.bf16.vlgmr.msra.gmra.mxu2 %v1171_v8  ;;  %233 = vmatmul.bf16.vlgmr.msra.gmra.mxu0 %v1167_v9 }
  0x35   :  { %472 = vmatpush.bf16.msrb.mxu2 %v1190_v45 }
  0x39   :  { %473 = vmatpush.bf16.msrb.mxu2 %v1189_v46 }
  0x3d   :  { %474 = vmatpush.bf16.msrb.mxu2 %v1188_v47 }
  0x41   :  { %475 = vmatpush.bf16.msrb.mxu2 %v1187_v49 }
  0x44   :  { %258 = vmatmul.bf16.gmra.mxu2 %v1172_v10  ;;  %238 = vmatmul.bf16.gmra.mxu0 %v1168_v11 }
  0x45   :  { %476 = vmatpush.bf16.msrb.mxu2 %v1186_v52 }
  0x49   :  { %477 = vmatpush.bf16.msrb.mxu2 %v1185_v53 }
  0x4d   :  { %478 = vmatpush.bf16.msrb.mxu2 %v1184_v54 }
  0x51   :  { %479 = vmatpush.bf16.msrb.mxu2 %v1183_v55 }
  0x54   :  { %263 = vmatmul.bf16.gmra.mxu2 %v1173_v12  ;;  %243 = vmatmul.bf16.gmra.mxu0 %v1169_v13 }
  0x64   :  { %268 = vmatmul.bf16.gmra.mxu2 %v1174_v14  ;;  %248 = vmatmul.bf16.gmra.mxu0 %v1170_v15 }
  0xb1   :  { %v234_v17 = vpop.f32.mrf.mxu0 }
  0xb7   :  { %v254_v16 = vpop.f32.mrf.mxu2 }
  0xb9   :  { %v236_v19 = vpop.f32.mrf.mxu0 }
  0xba   :  { %v274_v39 = vpack.c.bf16 %v236_v19, %v234_v17 }
  0xbf   :  { %v256_v18 = vpop.f32.mrf.mxu2 }
  0xc0   :  { %v278_v34 = vpack.c.bf16 %v256_v18, %v254_v16 }
  0xc1   :  { %v239_v21 = vpop.f32.mrf.mxu0 }
  0xc7   :  { %v259_v20 = vpop.f32.mrf.mxu2 }
  0xc9   :  { %v241_v23 = vpop.f32.mrf.mxu0 }
  0xca   :  { %v275_v38 = vpack.c.bf16 %v241_v23, %v239_v21 }
  0xcf   :  { %v261_v22 = vpop.f32.mrf.mxu2 }
  0xd0   :  { %v279_v33 = vpack.c.bf16 %v261_v22, %v259_v20 }
  0xd1   :  { %v244_v25 = vpop.f32.mrf.mxu0 }
  0xd7   :  { %v264_v24 = vpop.f32.mrf.mxu2 }
  0xd9   :  { %v246_v28 = vpop.f32.mrf.mxu0 }
  0xda   :  { %v276_v37 = vpack.c.bf16 %v246_v28, %v244_v25 }
  0xdf   :  { %v266_v26 = vpop.f32.mrf.mxu2 }
  0xe0   :  { %v280_v32 = vpack.c.bf16 %v266_v26, %v264_v24 }
  0xe1   :  { %v249_v31 = vpop.f32.mrf.mxu0 }
  0xe7   :  { %v269_v27 = vpop.f32.mrf.mxu2 }
  0xe9   :  { %v251_v35 = vpop.f32.mrf.mxu0 }
  0xea   :  { %v277_v36 = vpack.c.bf16 %v251_v35, %v249_v31 }
  0xef   :  { %v271_v29 = vpop.f32.mrf.mxu2 }
  0xf0   :  { %v281_v30 = vpack.c.bf16 %v271_v29, %v269_v27 }
  0xf2   :  { %334 = vmatpush.bf16.msra.mxu1 %v281_v30  ;;  %1207 = vmatpush.bf16.msra.mxu3 %v281_v30 }
  0xf6   :  { %335 = vmatpush.bf16.msra.mxu1 %v280_v32  ;;  %1208 = vmatpush.bf16.msra.mxu3 %v280_v32 }
  0xfa   :  { %336 = vmatpush.bf16.msra.mxu1 %v279_v33  ;;  %1209 = vmatpush.bf16.msra.mxu3 %v279_v33 }
  0xfe   :  { %337 = vmatpush.bf16.msra.mxu1 %v278_v34  ;;  %1210 = vmatpush.bf16.msra.mxu3 %v278_v34 }
 0x102   :  { %338 = vmatpush.bf16.msra.mxu1 %v277_v36  ;;  %1211 = vmatpush.bf16.msra.mxu3 %v277_v36 }
 0x106   :  { %339 = vmatpush.bf16.msra.mxu1 %v276_v37  ;;  %1212 = vmatpush.bf16.msra.mxu3 %v276_v37 }
 0x10a   :  { %340 = vmatpush.bf16.msra.mxu1 %v275_v38  ;;  %1213 = vmatpush.bf16.msra.mxu3 %v275_v38 }
 0x10e   :  { %341 = vmatpush.bf16.msra.mxu1 %v274_v39  ;;  %1214 = vmatpush.bf16.msra.mxu3 %v274_v39 }
 0x111   :  { %342 = vmatmul.bf16.vlgmr.msra.gmra.mxu1 %v1469_v40  ;;  %362 = vmatmul.bf16.vlgmr.msra.gmra.mxu3 %v1475_v42 }
 0x121   :  { %347 = vmatmul.bf16.gmra.mxu1 %v1472_v41  ;;  %367 = vmatmul.bf16.gmra.mxu3 %v1480_v44 }
 0x131   :  { %352 = vmatmul.bf16.gmra.mxu1 %v1478_v43  ;;  %372 = vmatmul.bf16.gmra.mxu3 %v1486_v50 }
 0x141   :  { %357 = vmatmul.bf16.gmra.mxu1 %v1484_v48  ;;  %377 = vmatmul.bf16.gmra.mxu3 %v1490_v51 }
 0x18e   :  { %v343_v56 = vpop.f32.mrf.mxu1 }
 0x18f   :  { %v344_v58 = vadd.f32 %v1226_v57, %v343_v56 }
 0x191   :  { %v383_v61 = vmax.f32 %v344_v58, 0.0 }
 0x194   :  { %v363_v13 = vpop.f32.mrf.mxu3 }
 0x195   :  { %v364_v24 = vadd.f32 %v1226_v57, %v363_v13 }
 0x196   :  { %v345_v59 = vpop.f32.mrf.mxu1 }
 0x197   :  { %v346_v60 = vadd.f32 %v1226_v57, %v345_v59  ;;  %v391_v26 = vmax.f32 %v364_v24, 0.0  ;;  %v1191_v24 = vld [vmem:[#allocation7 + $0x80] sm:$0xff] }
 0x199   :  { %v384_v62 = vmax.f32 %v346_v60, 0.0 }
 0x19b   :  { %v399_v63 = vpack.c.bf16 %v384_v62, %v383_v61 }
 0x19c   :  { %v365_v16 = vpop.f32.mrf.mxu3 }
 0x19d   :  { %480 = vmatmul.bf16.vlgmr.msrb.gmra.mxu2 %v399_v63  ;;  %v366_v25 = vadd.f32 %v1226_v57, %v365_v16 }
 0x19e   :  { %v348_v0 = vpop.f32.mrf.mxu1 }
 0x19f   :  { %v349_v1 = vadd.f32 %v1226_v57, %v348_v0  ;;  %v392_v27 = vmax.f32 %v366_v25, 0.0 }
 0x1a1   :  { %v385_v4 = vmax.f32 %v349_v1, 0.0  ;;  %v403_v29 = vpack.c.bf16 %v392_v27, %v391_v26  ;;  %v1227_v26 = vld [vmem:[#allocation8 + $0x1] ss:$0 sm:$0xff] }
 0x1a4   :  { %v368_v23 = vpop.f32.mrf.mxu3 }
 0x1a5   :  { %v369_v31 = vadd.f32 %v1226_v57, %v368_v23  ;;  %v1192_v23 = vld [vmem:[#allocation7 + $0x88] sm:$0xff] }
 0x1a6   :  { %v350_v2 = vpop.f32.mrf.mxu1 }
 0x1a7   :  { %v351_v3 = vadd.f32 %v1226_v57, %v350_v2  ;;  %v393_v33 = vmax.f32 %v369_v31, 0.0 }
 0x1a9   :  { %v386_v5 = vmax.f32 %v351_v3, 0.0 }
 0x1ab   :  { %v400_v6 = vpack.c.bf16 %v386_v5, %v385_v4 }
 0x1ac   :  { %v370_v28 = vpop.f32.mrf.mxu3 }
 0x1ad   :  { %485 = vmatmul.bf16.gmra.mxu2 %v400_v6  ;;  %v371_v32 = vadd.f32 %v1226_v57, %v370_v28 }
 0x1ae   :  { %v353_v7 = vpop.f32.mrf.mxu1 }
 0x1af   :  { %v354_v8 = vadd.f32 %v1226_v57, %v353_v7  ;;  %v394_v34 = vmax.f32 %v371_v32, 0.0 }
 0x1b1   :  { %v387_v11 = vmax.f32 %v354_v8, 0.0  ;;  %v404_v35 = vpack.c.bf16 %v394_v34, %v393_v33 }
 0x1b4   :  { %v373_v30 = vpop.f32.mrf.mxu3 }
 0x1b5   :  { %v374_v37 = vadd.f32 %v1226_v57, %v373_v30 }
 0x1b6   :  { %v355_v9 = vpop.f32.mrf.mxu1 }
 0x1b7   :  { %v356_v10 = vadd.f32 %v1226_v57, %v355_v9  ;;  %v395_v45 = vmax.f32 %v374_v37, 0.0 }
 0x1b9   :  { %v388_v12 = vmax.f32 %v356_v10, 0.0 }
 0x1bb   :  { %v401_v14 = vpack.c.bf16 %v388_v12, %v387_v11 }
 0x1bc   :  { %v375_v36 = vpop.f32.mrf.mxu3 }
 0x1bd   :  { %490 = vmatmul.bf16.gmra.mxu2 %v401_v14  ;;  %v376_v38 = vadd.f32 %v1226_v57, %v375_v36 }
 0x1be   :  { %v358_v15 = vpop.f32.mrf.mxu1 }
 0x1bf   :  { %v359_v17 = vadd.f32 %v1226_v57, %v358_v15  ;;  %v396_v46 = vmax.f32 %v376_v38, 0.0 }
 0x1c1   :  { %v389_v20 = vmax.f32 %v359_v17, 0.0  ;;  %v405_v47 = vpack.c.bf16 %v396_v46, %v395_v45  ;;  %v1198_v17 = vld [vmem:[#allocation7 + $0xb8] sm:$0xff] }
 0x1c2   :  { %672 = vmatpush.bf16.msrb.mxu0 %v1198_v17 }
 0x1c4   :  { %v378_v39 = vpop.f32.mrf.mxu3 }
 0x1c5   :  { %v379_v52 = vadd.f32 %v1226_v57, %v378_v39 }
 0x1c6   :  { %v360_v18 = vpop.f32.mrf.mxu1 }
 0x1c7   :  { %v361_v19 = vadd.f32 %v1226_v57, %v360_v18  ;;  %v397_v54 = vmax.f32 %v379_v52, 0.0  ;;  %v1197_v18 = vld [vmem:[#allocation7 + $0xb0] sm:$0xff] }
 0x1c8   :  { %673 = vmatpush.bf16.msrb.mxu0 %v1197_v18 }
 0x1c9   :  { %v390_v21 = vmax.f32 %v361_v19, 0.0  ;;  %v1196_v19 = vld [vmem:[#allocation7 + $0xa8] sm:$0xff] }
 0x1cb   :  { %v402_v22 = vpack.c.bf16 %v390_v21, %v389_v20  ;;  %v1195_v20 = vld [vmem:[#allocation7 + $0xa0] sm:$0xff]  ;;  %v1194_v21 = vld [vmem:[#allocation7 + $0x98] sm:$0xff] }
 0x1cc   :  { %v380_v49 = vpop.f32.mrf.mxu3  ;;  %674 = vmatpush.bf16.msrb.mxu0 %v1196_v19 }
 0x1cd   :  { %495 = vmatmul.bf16.gmra.mxu2 %v402_v22  ;;  %v381_v53 = vadd.f32 %v1226_v57, %v380_v49  ;;  %v1193_v22 = vld [vmem:[#allocation7 + $0x90] sm:$0xff] }
 0x1cf   :  { %v398_v55 = vmax.f32 %v381_v53, 0.0 }
 0x1d0   :  { %675 = vmatpush.bf16.msrb.mxu0 %v1195_v20 }
 0x1d1   :  { %v406_v56 = vpack.c.bf16 %v398_v55, %v397_v54 }
 0x1d4   :  { %676 = vmatpush.bf16.msrb.mxu0 %v1194_v21 }
 0x1d8   :  { %677 = vmatpush.bf16.msrb.mxu0 %v1193_v22 }
 0x1dc   :  { %678 = vmatpush.bf16.msrb.mxu0 %v1192_v23 }
 0x1dd   :  { %500 = vmatmul.bf16.gmra.mxu2 %v403_v29 }
 0x1e0   :  { %679 = vmatpush.bf16.msrb.mxu0 %v1191_v24 }
 0x1ed   :  { %505 = vmatmul.bf16.gmra.mxu2 %v404_v35 }
 0x1fd   :  { %510 = vmatmul.bf16.gmra.mxu2 %v405_v47 }
 0x20d   :  { %515 = vmatmul.bf16.gmra.mxu2 %v406_v56 }
 0x220   :  { %v481_v58 = vpop.f32.mrf.mxu2 }
 0x228   :  { %v483_v59 = vpop.f32.mrf.mxu2 }
 0x229   :  { %v521_v60 = vpack.c.bf16 %v483_v59, %v481_v58 }
 0x230   :  { %v486_v61 = vpop.f32.mrf.mxu2 }
 0x238   :  { %v488_v62 = vpop.f32.mrf.mxu2 }
 0x239   :  { %v522_v63 = vpack.c.bf16 %v488_v62, %v486_v61 }
 0x240   :  { %v491_v0 = vpop.f32.mrf.mxu2 }
 0x248   :  { %v493_v1 = vpop.f32.mrf.mxu2 }
 0x249   :  { %v523_v2 = vpack.c.bf16 %v493_v1, %v491_v0 }
 0x250   :  { %v496_v3 = vpop.f32.mrf.mxu2 }
 0x258   :  { %v498_v4 = vpop.f32.mrf.mxu2 }
 0x259   :  { %v524_v5 = vpack.c.bf16 %v498_v4, %v496_v3 }
 0x260   :  { %v501_v6 = vpop.f32.mrf.mxu2 }
 0x268   :  { %v503_v7 = vpop.f32.mrf.mxu2 }
 0x269   :  { %v525_v16 = vpack.c.bf16 %v503_v7, %v501_v6 }
 0x270   :  { %v506_v8 = vpop.f32.mrf.mxu2 }
 0x278   :  { %v508_v57 = vpop.f32.mrf.mxu2 }
 0x279   :  { %v526_v15 = vpack.c.bf16 %v508_v57, %v506_v8 }
 0x280   :  { %v511_v9 = vpop.f32.mrf.mxu2 }
 0x288   :  { %v513_v10 = vpop.f32.mrf.mxu2 }
 0x289   :  { %v527_v14 = vpack.c.bf16 %v513_v10, %v511_v9 }
 0x290   :  { %v516_v11 = vpop.f32.mrf.mxu2 }
 0x298   :  { %v518_v12 = vpop.f32.mrf.mxu2 }
 0x299   :  { %v528_v13 = vpack.c.bf16 %v518_v12, %v516_v11 }
 0x29b   :  { %534 = vmatpush.bf16.msrb.mxu3 %v528_v13 }
 0x29f   :  { %535 = vmatpush.bf16.msrb.mxu3 %v527_v14 }
 0x2a3   :  { %536 = vmatpush.bf16.msrb.mxu3 %v526_v15 }
 0x2a7   :  { %537 = vmatpush.bf16.msrb.mxu3 %v525_v16 }
 0x2ab   :  { %538 = vmatpush.bf16.msrb.mxu3 %v524_v5 }
 0x2af   :  { %539 = vmatpush.bf16.msrb.mxu3 %v523_v2 }
 0x2b3   :  { %540 = vmatpush.bf16.msrb.mxu3 %v522_v63 }
 0x2b7   :  { %541 = vmatpush.bf16.msrb.mxu3 %v521_v60 }
 0x2ba   :  { %542 = vmatmul.bf16.vlgmr.msrb.gmra.mxu3 %v1469_v40 }
 0x2ca   :  { %547 = vmatmul.bf16.gmra.mxu3 %v1472_v41 }
 0x2da   :  { %552 = vmatmul.bf16.gmra.mxu3 %v1478_v43 }
 0x2ea   :  { %557 = vmatmul.bf16.gmra.mxu3 %v1484_v48 }
 0x2fa   :  { %562 = vmatmul.bf16.gmra.mxu3 %v1475_v42 }
 0x30a   :  { %567 = vmatmul.bf16.gmra.mxu3 %v1480_v44 }
 0x31a   :  { %572 = vmatmul.bf16.gmra.mxu3 %v1486_v50 }
 0x32a   :  { %577 = vmatmul.bf16.gmra.mxu3 %v1490_v51 }
 0x33d   :  { %v543_v25 = vpop.f32.mrf.mxu3 }
 0x33e   :  { %v544_v27 = vadd.f32 %v1227_v26, %v543_v25 }
 0x340   :  { %v583_v30 = vmax.f32 %v544_v27, 0.0 }
 0x345   :  { %v545_v28 = vpop.f32.mrf.mxu3 }
 0x346   :  { %v546_v29 = vadd.f32 %v1227_v26, %v545_v28 }
 0x348   :  { %v584_v31 = vmax.f32 %v546_v29, 0.0 }
 0x34a   :  { %v599_v32 = vpack.c.bf16 %v584_v31, %v583_v30 }
 0x34c   :  { %680 = vmatmul.bf16.vlgmr.msrb.gmra.mxu0 %v599_v32 }
 0x34d   :  { %v548_v33 = vpop.f32.mrf.mxu3 }
 0x34e   :  { %v549_v34 = vadd.f32 %v1227_v26, %v548_v33 }
 0x350   :  { %v585_v37 = vmax.f32 %v549_v34, 0.0 }
 0x355   :  { %v550_v35 = vpop.f32.mrf.mxu3 }
 0x356   :  { %v551_v36 = vadd.f32 %v1227_v26, %v550_v35 }
 0x358   :  { %v586_v38 = vmax.f32 %v551_v36, 0.0 }
 0x35a   :  { %v600_v39 = vpack.c.bf16 %v586_v38, %v585_v37 }
 0x35c   :  { %685 = vmatmul.bf16.gmra.mxu0 %v600_v39 }
 0x35d   :  { %v553_v45 = vpop.f32.mrf.mxu3 }
 0x35e   :  { %v554_v46 = vadd.f32 %v1227_v26, %v553_v45 }
 0x360   :  { %v587_v52 = vmax.f32 %v554_v46, 0.0 }
 0x365   :  { %v555_v47 = vpop.f32.mrf.mxu3 }
 0x366   :  { %v556_v49 = vadd.f32 %v1227_v26, %v555_v47 }
 0x368   :  { %v588_v53 = vmax.f32 %v556_v49, 0.0 }
 0x36a   :  { %v601_v54 = vpack.c.bf16 %v588_v53, %v587_v52 }
 0x36c   :  { %690 = vmatmul.bf16.gmra.mxu0 %v601_v54 }
 0x36d   :  { %v558_v55 = vpop.f32.mrf.mxu3 }
 0x36e   :  { %v559_v56 = vadd.f32 %v1227_v26, %v558_v55 }
 0x370   :  { %v589_v60 = vmax.f32 %v559_v56, 0.0 }
 0x375   :  { %v560_v58 = vpop.f32.mrf.mxu3 }
 0x376   :  { %v561_v59 = vadd.f32 %v1227_v26, %v560_v58 }
 0x378   :  { %v590_v61 = vmax.f32 %v561_v59, 0.0  ;;  %v783_v59 = vlaneseq }
 0x37a   :  { %v602_v62 = vpack.c.bf16 %v590_v61, %v589_v60  ;;  %v1509_v60 = vand.u32 127, %v783_v59  ;;  %v1511_v61 = vld [vmem:[#allocation8 + $0x2] ss:$0 sm:$0xff] }
 0x37c   :  { %695 = vmatmul.bf16.gmra.mxu0 %v602_v62  ;;  %vm785_vm0 = vcmp.lt.s32.totalorder %v1509_v60, 16 }
 0x37d   :  { %v563_v63 = vpop.f32.mrf.mxu3 }
 0x37e   :  { %v564_v0 = vadd.f32 %v1227_v26, %v563_v63 }
 0x380   :  { %v591_v3 = vmax.f32 %v564_v0, 0.0 }
 0x385   :  { %v565_v1 = vpop.f32.mrf.mxu3 }
 0x386   :  { %v566_v2 = vadd.f32 %v1227_v26, %v565_v1 }
 0x388   :  { %v592_v4 = vmax.f32 %v566_v2, 0.0 }
 0x38a   :  { %v603_v5 = vpack.c.bf16 %v592_v4, %v591_v3 }
 0x38c   :  { %700 = vmatmul.bf16.gmra.mxu0 %v603_v5 }
 0x38d   :  { %v568_v6 = vpop.f32.mrf.mxu3 }
 0x38e   :  { %v569_v7 = vadd.f32 %v1227_v26, %v568_v6 }
 0x390   :  { %v593_v9 = vmax.f32 %v569_v7, 0.0 }
 0x395   :  { %v570_v8 = vpop.f32.mrf.mxu3 }
 0x396   :  { %v571_v57 = vadd.f32 %v1227_v26, %v570_v8 }
 0x398   :  { %v594_v10 = vmax.f32 %v571_v57, 0.0 }
 0x39a   :  { %v604_v11 = vpack.c.bf16 %v594_v10, %v593_v9 }
 0x39c   :  { %705 = vmatmul.bf16.gmra.mxu0 %v604_v11 }
 0x39d   :  { %v573_v12 = vpop.f32.mrf.mxu3 }
 0x39e   :  { %v574_v13 = vadd.f32 %v1227_v26, %v573_v12 }
 0x3a0   :  { %v595_v16 = vmax.f32 %v574_v13, 0.0 }
 0x3a5   :  { %v575_v14 = vpop.f32.mrf.mxu3 }
 0x3a6   :  { %v576_v15 = vadd.f32 %v1227_v26, %v575_v14 }
 0x3a8   :  { %v596_v17 = vmax.f32 %v576_v15, 0.0 }
 0x3aa   :  { %v605_v18 = vpack.c.bf16 %v596_v17, %v595_v16 }
 0x3ac   :  { %710 = vmatmul.bf16.gmra.mxu0 %v605_v18 }
 0x3ad   :  { %v578_v19 = vpop.f32.mrf.mxu3 }
 0x3ae   :  { %v579_v20 = vadd.f32 %v1227_v26, %v578_v19 }
 0x3b0   :  { %v597_v23 = vmax.f32 %v579_v20, 0.0 }
 0x3b5   :  { %v580_v21 = vpop.f32.mrf.mxu3 }
 0x3b6   :  { %v581_v22 = vadd.f32 %v1227_v26, %v580_v21 }
 0x3b8   :  { %v598_v24 = vmax.f32 %v581_v22, 0.0 }
 0x3ba   :  { %v606_v25 = vpack.c.bf16 %v598_v24, %v597_v23 }
 0x3bc   :  { %715 = vmatmul.bf16.gmra.mxu0 %v606_v25 }
 0x3c9   :  { %v681_v27 = vpop.f32.mrf.mxu0 }
 0x3d1   :  { %v683_v28 = vpop.f32.mrf.mxu0 }
 0x3d2   :  { %v721_v29 = vpack.c.bf16 %v683_v28, %v681_v27 }
 0x3d9   :  { %v686_v30 = vpop.f32.mrf.mxu0 }
 0x3e1   :  { %v688_v31 = vpop.f32.mrf.mxu0 }
 0x3e2   :  { %v722_v32 = vpack.c.bf16 %v688_v31, %v686_v30 }
 0x3e9   :  { %v691_v33 = vpop.f32.mrf.mxu0 }
 0x3f1   :  { %v693_v34 = vpop.f32.mrf.mxu0 }
 0x3f2   :  { %v723_v35 = vpack.c.bf16 %v693_v34, %v691_v33 }
 0x3f9   :  { %v696_v36 = vpop.f32.mrf.mxu0 }
 0x401   :  { %v698_v37 = vpop.f32.mrf.mxu0 }
 0x402   :  { %v724_v38 = vpack.c.bf16 %v698_v37, %v696_v36 }
 0x409   :  { %v701_v39 = vpop.f32.mrf.mxu0 }
 0x411   :  { %v703_v45 = vpop.f32.mrf.mxu0 }
 0x412   :  { %v725_v58 = vpack.c.bf16 %v703_v45, %v701_v39 }
 0x419   :  { %v706_v46 = vpop.f32.mrf.mxu0 }
 0x421   :  { %v708_v26 = vpop.f32.mrf.mxu0 }
 0x422   :  { %v726_v56 = vpack.c.bf16 %v708_v26, %v706_v46 }
 0x429   :  { %v711_v47 = vpop.f32.mrf.mxu0 }
 0x431   :  { %v713_v49 = vpop.f32.mrf.mxu0 }
 0x432   :  { %v727_v55 = vpack.c.bf16 %v713_v49, %v711_v47 }
 0x439   :  { %v716_v52 = vpop.f32.mrf.mxu0 }
 0x441   :  { %v718_v53 = vpop.f32.mrf.mxu0 }
 0x442   :  { %v728_v54 = vpack.c.bf16 %v718_v53, %v716_v52 }
 0x444   :  { %734 = vmatpush.bf16.msrb.mxu1 %v728_v54 }
 0x448   :  { %735 = vmatpush.bf16.msrb.mxu1 %v727_v55 }
 0x44c   :  { %736 = vmatpush.bf16.msrb.mxu1 %v726_v56 }
 0x450   :  { %737 = vmatpush.bf16.msrb.mxu1 %v725_v58 }
 0x454   :  { %738 = vmatpush.bf16.msrb.mxu1 %v724_v38 }
 0x458   :  { %739 = vmatpush.bf16.msrb.mxu1 %v723_v35 }
 0x45c   :  { %740 = vmatpush.bf16.msrb.mxu1 %v722_v32 }
 0x460   :  { %741 = vmatpush.bf16.msrb.mxu1 %v721_v29 }
 0x463   :  { %742 = vmatmul.bf16.vlgmr.msrb.gmra.mxu1 %v1469_v40 }
 0x473   :  { %747 = vmatmul.bf16.gmra.mxu1 %v1472_v41 }
 0x483   :  { %752 = vmatmul.bf16.gmra.mxu1 %v1478_v43 }
 0x493   :  { %757 = vmatmul.bf16.gmra.mxu1 %v1484_v48 }
 0x4a3   :  { %762 = vmatmul.bf16.gmra.mxu1 %v1475_v42 }
 0x4b3   :  { %767 = vmatmul.bf16.gmra.mxu1 %v1480_v44 }
 0x4c3   :  { %772 = vmatmul.bf16.gmra.mxu1 %v1486_v50 }
 0x4d3   :  { %777 = vmatmul.bf16.gmra.mxu1 %v1490_v51 }
 0x4e0   :  { %v743_v40 = vpop.f32.mrf.mxu1 }
 0x4e1   :  { %v744_v41 = vadd.f32 %v1511_v61, %v743_v40 }
 0x4e3   :  { %v786_v43 = vsel %vm785_vm0, %v744_v41, -1e+30 }
 0x4e4   :  { %802 = vmax.xlane.f32.xlu0 %v786_v43 }
 0x4e8   :  { %v745_v42 = vpop.f32.mrf.mxu1 }
 0x4e9   :  { %v746_v44 = vadd.f32 %v1511_v61, %v745_v42 }
 0x4eb   :  { %v1520_v48 = vsel %vm785_vm0, %v746_v44, -1e+30 }
 0x4ec   :  { %804 = vmax.xlane.f32.xlu0 %v1520_v48 }
 0x4f0   :  { %v748_v50 = vpop.f32.mrf.mxu1 }
 0x4f1   :  { %v749_v51 = vadd.f32 %v1511_v61, %v748_v50 }
 0x4f3   :  { %v1526_v62 = vsel %vm785_vm0, %v749_v51, -1e+30 }
 0x4f4   :  { %806 = vmax.xlane.f32.xlu1 %v1526_v62 }
 0x4f8   :  { %v750_v63 = vpop.f32.mrf.mxu1 }
 0x4f9   :  { %v751_v0 = vadd.f32 %v1511_v61, %v750_v63 }
 0x4fb   :  { %v1532_v1 = vsel %vm785_vm0, %v751_v0, -1e+30 }
 0x4fc   :  { %808 = vmax.xlane.f32.xlu1 %v1532_v1 }
 0x500   :  { %v753_v2 = vpop.f32.mrf.mxu1 }
 0x501   :  { %v754_v3 = vadd.f32 %v1511_v61, %v753_v2 }
 0x503   :  { %v1538_v4 = vsel %vm785_vm0, %v754_v3, -1e+30 }
 0x504   :  { %810 = vmax.xlane.f32.xlu2 %v1538_v4 }
 0x508   :  { %v755_v5 = vpop.f32.mrf.mxu1 }
 0x509   :  { %v756_v6 = vadd.f32 %v1511_v61, %v755_v5 }
 0x50b   :  { %v1544_v7 = vsel %vm785_vm0, %v756_v6, -1e+30 }
 0x50c   :  { %812 = vmax.xlane.f32.xlu2 %v1544_v7 }
 0x510   :  { %v758_v8 = vpop.f32.mrf.mxu1 }
 0x511   :  { %v759_v57 = vadd.f32 %v1511_v61, %v758_v8 }
 0x513   :  { %v1550_v9 = vsel %vm785_vm0, %v759_v57, -1e+30 }
 0x514   :  { %814 = vmax.xlane.f32.xlu0 %v1550_v9 }
 0x518   :  { %v760_v10 = vpop.f32.mrf.mxu1 }
 0x519   :  { %v761_v11 = vadd.f32 %v1511_v61, %v760_v10 }
 0x51b   :  { %v1556_v12 = vsel %vm785_vm0, %v761_v11, -1e+30 }
 0x51c   :  { %816 = vmax.xlane.f32.xlu1 %v1556_v12 }
 0x520   :  { %v763_v13 = vpop.f32.mrf.mxu1 }
 0x521   :  { %v764_v14 = vadd.f32 %v1511_v61, %v763_v13 }
 0x523   :  { %v1562_v15 = vsel %vm785_vm0, %v764_v14, -1e+30 }
 0x524   :  { %818 = vmax.xlane.f32.xlu2 %v1562_v15 }
 0x528   :  { %v765_v16 = vpop.f32.mrf.mxu1 }
 0x529   :  { %v766_v17 = vadd.f32 %v1511_v61, %v765_v16 }
 0x52b   :  { %v1568_v18 = vsel %vm785_vm0, %v766_v17, -1e+30 }
 0x52c   :  { %820 = vmax.xlane.f32.xlu0 %v1568_v18 }
 0x530   :  { %v768_v19 = vpop.f32.mrf.mxu1 }
 0x531   :  { %v769_v20 = vadd.f32 %v1511_v61, %v768_v19 }
 0x533   :  { %v1574_v21 = vsel %vm785_vm0, %v769_v20, -1e+30 }
 0x534   :  { %822 = vmax.xlane.f32.xlu1 %v1574_v21 }
 0x538   :  { %v770_v22 = vpop.f32.mrf.mxu1 }
 0x539   :  { %v771_v23 = vadd.f32 %v1511_v61, %v770_v22 }
 0x53b   :  { %v1580_v24 = vsel %vm785_vm0, %v771_v23, -1e+30 }
 0x53c   :  { %824 = vmax.xlane.f32.xlu2 %v1580_v24 }
 0x540   :  { %v773_v25 = vpop.f32.mrf.mxu1 }
 0x541   :  { %v774_v27 = vadd.f32 %v1511_v61, %v773_v25 }
 0x543   :  { %v1586_v28 = vsel %vm785_vm0, %v774_v27, -1e+30 }
 0x544   :  { %826 = vmax.xlane.f32.xlu0 %v1586_v28 }
 0x548   :  { %v775_v29 = vpop.f32.mrf.mxu1 }
 0x549   :  { %v776_v30 = vadd.f32 %v1511_v61, %v775_v29 }
 0x54b   :  { %v1592_v31 = vsel %vm785_vm0, %v776_v30, -1e+30 }
 0x54c   :  { %828 = vmax.xlane.f32.xlu1 %v1592_v31 }
 0x550   :  { %v778_v32 = vpop.f32.mrf.mxu1 }
 0x551   :  { %v779_v33 = vadd.f32 %v1511_v61, %v778_v32 }
 0x553   :  { %v1598_v34 = vsel %vm785_vm0, %v779_v33, -1e+30 }
 0x554   :  { %830 = vmax.xlane.f32.xlu2 %v1598_v34 }
 0x557   :  { %v803_v35 = vpop.xlane.xlu0 %802 }
 0x558   :  { %v1601_v36 = vsub.f32 %v786_v43, %v803_v35  ;;  %v780_v37 = vpop.f32.mrf.mxu1 }
 0x559   :  { %v781_v38 = vadd.f32 %v1511_v61, %v780_v37 }
 0x55a   :  { %v850_v39 = vmul.f32 1.442695, %v1601_v36 }
 0x55b   :  { %v1607_v45 = vsel %vm785_vm0, %v781_v38, -1e+30 }
 0x55c   :  { %1229 = vpow2.f32 %v850_v39  ;;  %832 = vmax.xlane.f32.xlu0 %v1607_v45 }
 0x55f   :  { %v805_v46 = vpop.xlane.xlu0 %804 }
 0x560   :  { %v1611_v26 = vsub.f32 %v1520_v48, %v805_v46 }
 0x562   :  { %v1230_v47 = vpop.eup %1229  ;;  %v852_v49 = vmul.f32 1.442695, %v1611_v26 }
 0x563   :  { %882 = vadd.xlane.f32.xlu1 %v1230_v47 }
 0x564   :  { %1231 = vpow2.f32 %v852_v49 }
 0x567   :  { %v807_v52 = vpop.xlane.xlu1 %806 }
 0x568   :  { %v1615_v53 = vsub.f32 %v1526_v62, %v807_v52 }
 0x56a   :  { %v1232_v54 = vpop.eup %1231  ;;  %v854_v55 = vmul.f32 1.442695, %v1615_v53 }
 0x56b   :  { %884 = vadd.xlane.f32.xlu2 %v1232_v54 }
 0x56c   :  { %1233 = vpow2.f32 %v854_v55 }
 0x56f   :  { %v809_v56 = vpop.xlane.xlu1 %808 }
 0x570   :  { %v1619_v58 = vsub.f32 %v1532_v1, %v809_v56 }
 0x572   :  { %v1234_v59 = vpop.eup %1233  ;;  %v856_v60 = vmul.f32 1.442695, %v1619_v58 }
 0x573   :  { %886 = vadd.xlane.f32.xlu0 %v1234_v59 }
 0x574   :  { %1235 = vpow2.f32 %v856_v60 }
 0x577   :  { %v811_v61 = vpop.xlane.xlu2 %810 }
 0x578   :  { %v1623_v40 = vsub.f32 %v1538_v4, %v811_v61 }
 0x57a   :  { %v1236_v41 = vpop.eup %1235  ;;  %v858_v43 = vmul.f32 1.442695, %v1623_v40 }
 0x57b   :  { %888 = vadd.xlane.f32.xlu1 %v1236_v41 }
 0x57c   :  { %1237 = vpow2.f32 %v858_v43 }
 0x57f   :  { %v813_v42 = vpop.xlane.xlu2 %812 }
 0x580   :  { %v1627_v44 = vsub.f32 %v1544_v7, %v813_v42 }
 0x582   :  { %v1238_v48 = vpop.eup %1237  ;;  %v860_v50 = vmul.f32 1.442695, %v1627_v44 }
 0x583   :  { %890 = vadd.xlane.f32.xlu2 %v1238_v48 }
 0x584   :  { %1239 = vpow2.f32 %v860_v50 }
 0x587   :  { %v815_v51 = vpop.xlane.xlu0 %814 }
 0x588   :  { %v1631_v62 = vsub.f32 %v1550_v9, %v815_v51 }
 0x58a   :  { %v1240_v63 = vpop.eup %1239  ;;  %v862_v0 = vmul.f32 1.442695, %v1631_v62 }
 0x58b   :  { %892 = vadd.xlane.f32.xlu0 %v1240_v63 }
 0x58c   :  { %1241 = vpow2.f32 %v862_v0 }
 0x58f   :  { %v817_v1 = vpop.xlane.xlu1 %816 }
 0x590   :  { %v1635_v2 = vsub.f32 %v1556_v12, %v817_v1 }
 0x592   :  { %v1242_v3 = vpop.eup %1241  ;;  %v864_v4 = vmul.f32 1.442695, %v1635_v2 }
 0x593   :  { %894 = vadd.xlane.f32.xlu1 %v1242_v3 }
 0x594   :  { %1243 = vpow2.f32 %v864_v4 }
 0x597   :  { %v819_v5 = vpop.xlane.xlu2 %818 }
 0x598   :  { %v1639_v6 = vsub.f32 %v1562_v15, %v819_v5 }
 0x59a   :  { %v1244_v7 = vpop.eup %1243  ;;  %v866_v8 = vmul.f32 1.442695, %v1639_v6 }
 0x59b   :  { %896 = vadd.xlane.f32.xlu2 %v1244_v7 }
 0x59c   :  { %1245 = vpow2.f32 %v866_v8 }
 0x59f   :  { %v821_v57 = vpop.xlane.xlu0 %820 }
 0x5a0   :  { %v1643_v9 = vsub.f32 %v1568_v18, %v821_v57 }
 0x5a2   :  { %v1246_v10 = vpop.eup %1245  ;;  %v868_v11 = vmul.f32 1.442695, %v1643_v9 }
 0x5a3   :  { %898 = vadd.xlane.f32.xlu0 %v1246_v10 }
 0x5a4   :  { %1247 = vpow2.f32 %v868_v11 }
 0x5a7   :  { %v823_v12 = vpop.xlane.xlu1 %822 }
 0x5a8   :  { %v1647_v13 = vsub.f32 %v1574_v21, %v823_v12 }
 0x5aa   :  { %v1248_v14 = vpop.eup %1247  ;;  %v870_v15 = vmul.f32 1.442695, %v1647_v13 }
 0x5ab   :  { %900 = vadd.xlane.f32.xlu1 %v1248_v14 }
 0x5ac   :  { %1249 = vpow2.f32 %v870_v15 }
 0x5af   :  { %v825_v16 = vpop.xlane.xlu2 %824 }
 0x5b0   :  { %v1651_v17 = vsub.f32 %v1580_v24, %v825_v16 }
 0x5b2   :  { %v1250_v18 = vpop.eup %1249  ;;  %v872_v19 = vmul.f32 1.442695, %v1651_v17 }
 0x5b3   :  { %902 = vadd.xlane.f32.xlu2 %v1250_v18 }
 0x5b4   :  { %1251 = vpow2.f32 %v872_v19 }
 0x5b7   :  { %v827_v20 = vpop.xlane.xlu0 %826 }
 0x5b8   :  { %v1655_v22 = vsub.f32 %v1586_v28, %v827_v20 }
 0x5ba   :  { %v1252_v21 = vpop.eup %1251  ;;  %v874_v23 = vmul.f32 1.442695, %v1655_v22 }
 0x5bb   :  { %904 = vadd.xlane.f32.xlu0 %v1252_v21 }
 0x5bc   :  { %1253 = vpow2.f32 %v874_v23 }
 0x5bf   :  { %v829_v25 = vpop.xlane.xlu1 %828 }
 0x5c0   :  { %v1659_v27 = vsub.f32 %v1592_v31, %v829_v25 }
 0x5c2   :  { %v1254_v24 = vpop.eup %1253  ;;  %v876_v29 = vmul.f32 1.442695, %v1659_v27 }
 0x5c3   :  { %906 = vadd.xlane.f32.xlu1 %v1254_v24 }
 0x5c4   :  { %1255 = vpow2.f32 %v876_v29 }
 0x5c7   :  { %v831_v30 = vpop.xlane.xlu2 %830 }
 0x5c8   :  { %v1663_v32 = vsub.f32 %v1598_v34, %v831_v30 }
 0x5ca   :  { %v1256_v28 = vpop.eup %1255  ;;  %v878_v33 = vmul.f32 1.442695, %v1663_v32 }
 0x5cb   :  { %908 = vadd.xlane.f32.xlu2 %v1256_v28 }
 0x5cc   :  { %1257 = vpow2.f32 %v878_v33 }
 0x5cf   :  { %v833_v35 = vpop.xlane.xlu0 %832 }
 0x5d0   :  { %v1667_v37 = vsub.f32 %v1607_v45, %v833_v35 }
 0x5d2   :  { %v1258_v31 = vpop.eup %1257  ;;  %v880_v38 = vmul.f32 1.442695, %v1667_v37 }
 0x5d3   :  { %910 = vadd.xlane.f32.xlu0 %v1258_v31 }
 0x5d4   :  { %1259 = vpow2.f32 %v880_v38 }
 0x5d6   :  { %v883_v39 = vpop.xlane.xlu1 %882 }
 0x5d7   :  { %1261 = vlog2.f32 %v883_v39 }
 0x5da   :  { %v1260_v46 = vpop.eup %1259 }
 0x5db   :  { %912 = vadd.xlane.f32.xlu1 %v1260_v46 }
 0x5dd   :  { %v1262_v34 = vpop.eup %1261 }
 0x5de   :  { %v915_v47 = vmul.f32 0.6931472, %v1262_v34  ;;  %v885_v49 = vpop.xlane.xlu2 %884 }
 0x5df   :  { %1263 = vlog2.f32 %v885_v49 }
 0x5e0   :  { %v946_v52 = vsub.f32 %v1601_v36, %v915_v47 }
 0x5e2   :  { %962 = vst [vmem:[#allocation10] sm:$0xff] %v946_v52 }
 0x5e5   :  { %v1264_v54 = vpop.eup %1263 }
 0x5e6   :  { %v917_v55 = vmul.f32 0.6931472, %v1264_v54  ;;  %v887_v45 = vpop.xlane.xlu0 %886 }
 0x5e7   :  { %1265 = vlog2.f32 %v887_v45 }
 0x5e8   :  { %v947_v56 = vsub.f32 %v1611_v26, %v917_v55 }
 0x5ea   :  { %963 = vst [vmem:[#allocation10 + $0x8] sm:$0xff] %v947_v56 }
 0x5ed   :  { %v1266_v59 = vpop.eup %1265 }
 0x5ee   :  { %v919_v60 = vmul.f32 0.6931472, %v1266_v59  ;;  %v889_v61 = vpop.xlane.xlu1 %888 }
 0x5ef   :  { %1267 = vlog2.f32 %v889_v61 }
 0x5f0   :  { %v948_v41 = vsub.f32 %v1615_v53, %v919_v60 }
 0x5f2   :  { %964 = vst [vmem:[#allocation10 + $0x10] sm:$0xff] %v948_v41 }
 0x5f5   :  { %v1268_v43 = vpop.eup %1267 }
 0x5f6   :  { %v921_v42 = vmul.f32 0.6931472, %v1268_v43  ;;  %v891_v48 = vpop.xlane.xlu2 %890 }
 0x5f7   :  { %1269 = vlog2.f32 %v891_v48 }
 0x5f8   :  { %v949_v36 = vsub.f32 %v1619_v58, %v921_v42 }
 0x5fa   :  { %965 = vst [vmem:[#allocation10 + $0x18] sm:$0xff] %v949_v36 }
 0x5fd   :  { %v1270_v50 = vpop.eup %1269 }
 0x5fe   :  { %v923_v51 = vmul.f32 0.6931472, %v1270_v50  ;;  %v893_v63 = vpop.xlane.xlu0 %892 }
 0x5ff   :  { %1271 = vlog2.f32 %v893_v63 }
 0x600   :  { %v950_v26 = vsub.f32 %v1623_v40, %v923_v51 }
 0x602   :  { %966 = vst [vmem:[#allocation10 + $0x20] sm:$0xff] %v950_v26 }
 0x605   :  { %v1272_v0 = vpop.eup %1271 }
 0x606   :  { %v925_v1 = vmul.f32 0.6931472, %v1272_v0  ;;  %v895_v3 = vpop.xlane.xlu1 %894 }
 0x607   :  { %1273 = vlog2.f32 %v895_v3 }
 0x608   :  { %v951_v53 = vsub.f32 %v1627_v44, %v925_v1 }
 0x60a   :  { %967 = vst [vmem:[#allocation10 + $0x28] sm:$0xff] %v951_v53 }
 0x60d   :  { %v1274_v4 = vpop.eup %1273 }
 0x60e   :  { %v927_v5 = vmul.f32 0.6931472, %v1274_v4  ;;  %v897_v7 = vpop.xlane.xlu2 %896 }
 0x60f   :  { %1275 = vlog2.f32 %v897_v7 }
 0x610   :  { %v952_v58 = vsub.f32 %v1631_v62, %v927_v5 }
 0x612   :  { %968 = vst [vmem:[#allocation10 + $0x30] sm:$0xff] %v952_v58 }
 0x615   :  { %v1276_v8 = vpop.eup %1275 }
 0x616   :  { %v929_v57 = vmul.f32 0.6931472, %v1276_v8  ;;  %v899_v10 = vpop.xlane.xlu0 %898 }
 0x617   :  { %1277 = vlog2.f32 %v899_v10 }
 0x618   :  { %v953_v40 = vsub.f32 %v1635_v2, %v929_v57 }
 0x61a   :  { %969 = vst [vmem:[#allocation10 + $0x38] sm:$0xff] %v953_v40 }
 0x61d   :  { %v1278_v11 = vpop.eup %1277 }
 0x61e   :  { %v931_v12 = vmul.f32 0.6931472, %v1278_v11  ;;  %v901_v14 = vpop.xlane.xlu1 %900 }
 0x61f   :  { %1279 = vlog2.f32 %v901_v14 }
 0x620   :  { %v954_v44 = vsub.f32 %v1639_v6, %v931_v12 }
 0x622   :  { %970 = vst [vmem:[#allocation10 + $0x40] sm:$0xff] %v954_v44 }
 0x625   :  { %v1280_v15 = vpop.eup %1279 }
 0x626   :  { %v933_v16 = vmul.f32 0.6931472, %v1280_v15  ;;  %v903_v18 = vpop.xlane.xlu2 %902 }
 0x627   :  { %1281 = vlog2.f32 %v903_v18 }
 0x628   :  { %v955_v62 = vsub.f32 %v1643_v9, %v933_v16 }
 0x62a   :  { %971 = vst [vmem:[#allocation10 + $0x48] sm:$0xff] %v955_v62 }
 0x62d   :  { %v1282_v19 = vpop.eup %1281 }
 0x62e   :  { %v935_v20 = vmul.f32 0.6931472, %v1282_v19  ;;  %v905_v21 = vpop.xlane.xlu0 %904 }
 0x62f   :  { %1283 = vlog2.f32 %v905_v21 }
 0x630   :  { %v956_v2 = vsub.f32 %v1647_v13, %v935_v20 }
 0x632   :  { %972 = vst [vmem:[#allocation10 + $0x50] sm:$0xff] %v956_v2 }
 0x635   :  { %v1284_v23 = vpop.eup %1283 }
 0x636   :  { %v937_v25 = vmul.f32 0.6931472, %v1284_v23  ;;  %v907_v24 = vpop.xlane.xlu1 %906 }
 0x637   :  { %1285 = vlog2.f32 %v907_v24 }
 0x638   :  { %v957_v6 = vsub.f32 %v1651_v17, %v937_v25 }
 0x63a   :  { %973 = vst [vmem:[#allocation10 + $0x58] sm:$0xff] %v957_v6 }
 0x63d   :  { %v1286_v29 = vpop.eup %1285 }
 0x63e   :  { %v939_v30 = vmul.f32 0.6931472, %v1286_v29  ;;  %v909_v28 = vpop.xlane.xlu2 %908 }
 0x63f   :  { %1287 = vlog2.f32 %v909_v28 }
 0x640   :  { %v958_v9 = vsub.f32 %v1655_v22, %v939_v30 }
 0x642   :  { %974 = vst [vmem:[#allocation10 + $0x60] sm:$0xff] %v958_v9 }
 0x645   :  { %v1288_v33 = vpop.eup %1287 }
 0x646   :  { %v941_v35 = vmul.f32 0.6931472, %v1288_v33  ;;  %v911_v31 = vpop.xlane.xlu0 %910 }
 0x647   :  { %1289 = vlog2.f32 %v911_v31 }
 0x648   :  { %v959_v13 = vsub.f32 %v1659_v27, %v941_v35 }
 0x64a   :  { %975 = vst [vmem:[#allocation10 + $0x68] sm:$0xff] %v959_v13 }
 0x64d   :  { %v1290_v38 = vpop.eup %1289 }
 0x64e   :  { %v943_v39 = vmul.f32 0.6931472, %v1290_v38  ;;  %v913_v46 = vpop.xlane.xlu1 %912 }
 0x64f   :  { %1291 = vlog2.f32 %v913_v46 }
 0x650   :  { %v960_v17 = vsub.f32 %v1663_v32, %v943_v39 }
 0x652   :  { %976 = vst [vmem:[#allocation10 + $0x70] sm:$0xff] %v960_v17 }
 0x655   :  { %v1292_v22 = vpop.eup %1291 }
 0x656   :  { %v945_v34 = vmul.f32 0.6931472, %v1292_v22 }
 0x658   :  { %v961_v27 = vsub.f32 %v1667_v37, %v945_v34 }
 0x65a   :  { %977 = vst [vmem:[#allocation10 + $0x78] sm:$0xff] %v961_v27 }
 0x65b   :  { %990 = dma.vmem_to_hbm [thread:$0]  %s983_s3, 2048, %s985_s13, [#allocation4], %s1430_s14, %s1430_s14, %s1431_s15  }
 0x65c   :  { %1419 = dma.done.wait [#allocation4], 2048  }
 0x65d   :  { %1420 = vsyncadd [#allocation4], 4294965248 }
 0x65e   :  { %995 = vsyncpa [#allocation3], 1 }
 0x65f   :  { %996 = vsyncpa [#allocation6], 1 }
 0x660   :  { %997 = vsyncpa [#allocation9], 1 }
 0x661   :  { %998 = vsyncpa [#allocation4], 1 }

</bundles_post_ra>
